<compile_context>
chip_gen: v7x
topology: tpu7x:2x2x1
jax: 0.10.0
libtpu: 0.0.40
codegen_flags: <defaults>
</compile_context>

<pallas_src>
import jax
import jax.numpy as jnp
from jax.experimental import pallas as pl
from jax.experimental.pallas import tpu as pltpu


def _tv_kernel(x_ref, htv_ref, wtv_ref):
    # x_ref:   (TP, H, W) block of planes in VMEM.
    # htv_ref: (1, 1, W)   f32 VMEM accumulator (resident across the reduction axis).
    # wtv_ref: (1, 1, W-1) f32 VMEM accumulator.
    @pl.when(pl.program_id(1) == 0)
    def _init():
        htv_ref[...] = jnp.zeros_like(htv_ref)
        wtv_ref[...] = jnp.zeros_like(wtv_ref)

    # Shifted loads from the ref (keeps XLU free for the sublane reductions).
    dh = (x_ref[:, 1:, :].astype(jnp.float32)
          - x_ref[:, :-1, :].astype(jnp.float32))          # (TP, H-1, W)
    dw = (x_ref[:, :, 1:].astype(jnp.float32)
          - x_ref[:, :, :-1].astype(jnp.float32))          # (TP, H, W-1)

    # Reduce only over plane + sublane axes; keep the lane axis (no per-step
    # cross-lane reduction, no scalar path).
    htv_ref[...] += jnp.sum(dh * dh, axis=(0, 1), keepdims=True)
    wtv_ref[...] += jnp.sum(dw * dw, axis=(0, 1), keepdims=True)


def tvl2_loss(x, tvloss_weight=1.0):
    """x: (B, C, H, W). Returns scalar float32 matching TVL2.forward."""
    b, c, h, w = x.shape
    assert h >= 2 and w >= 2, "TVL2 needs H,W >= 2 (PyTorch divides by zero otherwise)"

    bc = b * c
    itemsize = jnp.dtype(x.dtype).itemsize
    plane_bytes = h * w * itemsize

    # Leading parallel axis (2 slots -> both v7x TensorCores; cheap elsewhere).
    P = 2
    # Planes per block: target ~2 MiB blocks, but don't over-pad small inputs.
    target_block_bytes = 2 * 1024 * 1024
    tp = max(1, min(target_block_bytes // plane_bytes, pl.cdiv(bc, P)))
    G = pl.cdiv(bc, P * tp)               # reduction-axis grid extent per parallel slot
    total = P * G * tp

    x_flat = x.reshape(bc, h, w)
    pad = total - bc
    if pad > 0:
        # Zero planes contribute exactly 0 to both TV sums.
        x_flat = jnp.pad(x_flat, ((0, pad), (0, 0), (0, 0)))

    # VMEM budget: input double-buffer + f32 temporaries, with generous headroom,
    # capped below v7x's 64 MiB physical VMEM.
    block_f32_bytes = tp * h * w * 4
    vmem_limit = int(min(64 * 2**20, max(32 * 2**20, 6 * block_f32_bytes)))

    cost = pl.CostEstimate(
        flops=6 * bc * h * w,
        transcendentals=0,
        bytes_accessed=bc * h * w * itemsize,
    )

    htv_parts, wtv_parts = pl.pallas_call(
        _tv_kernel,
        out_shape=(
            jax.ShapeDtypeStruct((P, 1, w), jnp.float32),
            jax.ShapeDtypeStruct((P, 1, w - 1), jnp.float32),
        ),
        grid_spec=pltpu.PrefetchScalarGridSpec(
            num_scalar_prefetch=0,
            grid=(P, G),
            in_specs=[
                pl.BlockSpec((tp, h, w), lambda p, i: (p * G + i, 0, 0)),
            ],
            out_specs=[
                # One partial-accumulator row per parallel slot; block index is
                # constant along the reduction axis -> VMEM-resident accumulator.
                pl.BlockSpec((1, 1, w), lambda p, i: (p, 0, 0)),
                pl.BlockSpec((1, 1, w - 1), lambda p, i: (p, 0, 0)),
            ],
        ),
        compiler_params=pltpu.CompilerParams(
            dimension_semantics=("parallel", "arbitrary"),
            vmem_limit_bytes=vmem_limit,
        ),
        cost_estimate=cost,
    )(x_flat)

    # Final cross-lane / cross-core collapse in plain JAX (tiny arrays).
    h_tv = jnp.sum(htv_parts)
    w_tv = jnp.sum(wtv_parts)
    count_h = c * (h - 1) * w
    count_w = c * h * (w - 1)
    return tvloss_weight * 2.0 * (h_tv / count_h + w_tv / count_w) / b


def tvl2_ref(x, tvloss_weight=1.0):
    """Pure-JAX reference (mirrors the PyTorch module exactly)."""
    b, c, h, w = x.shape
    xf = x.astype(jnp.float32)
    h_tv = jnp.sum((xf[:, :, 1:, :] - xf[:, :, : h - 1, :]) ** 2)
    w_tv = jnp.sum((xf[:, :, :, 1:] - xf[:, :, :, : w - 1]) ** 2)
    count_h = c * (h - 1) * w
    count_w = c * h * (w - 1)
    return tvloss_weight * 2.0 * (h_tv / count_h + w_tv / count_w) / b


if __name__ == "__main__":
    key = jax.random.PRNGKey(0)
    x = jax.random.normal(key, (2, 4, 16, 16), dtype=jnp.float32)

    out = jax.jit(tvl2_loss)(x)
    out = jax.block_until_ready(out)

    ref = tvl2_ref(x)
    assert jnp.allclose(out, ref, rtol=1e-5, atol=1e-5), (out, ref)
    print("KERNEL_OK")
</pallas_src>

<mosaic_0001>
module attributes {stable_mosaic.version = 11 : i64} {
  func.func @_tv_kernel(%arg0: i32, %arg1: i32, %arg2: memref<4x16x16xf32, #tpu.memory_space<vmem>>, %arg3: memref<1x1x16xf32, #tpu.memory_space<vmem>>, %arg4: memref<1x1x15xf32, #tpu.memory_space<vmem>>) attributes {dimension_semantics = [#tpu.dimension_semantics<parallel>, #tpu.dimension_semantics<arbitrary>], iteration_bounds = array<i64: 2, 1>, scalar_prefetch = 0 : i64, scratch_operands = 0 : i64, tpu.core_type = #tpu.core_type<tc>, window_params = [{transform_indices = @transform_0, window_bounds = array<i64: 4, 16, 16>}, {transform_indices = @transform_1, window_bounds = array<i64: 1, 1, 16>}, {transform_indices = @transform_2, window_bounds = array<i64: 1, 1, 15>}]} {
    %c0_i32 = arith.constant 0 : i32
    %0 = arith.cmpi eq, %arg1, %c0_i32 : i32
    %1 = arith.extui %0 : i1 to i32
    %c0_i32_0 = arith.constant 0 : i32
    %2 = arith.cmpi ne, %1, %c0_i32_0 : i32
    scf.if %2 {
      %cst_24 = arith.constant 0.000000e+00 : f32
      %21 = vector.broadcast %cst_24 : f32 to vector<1x1x16xf32>
      %c0_25 = arith.constant 0 : index
      %c0_26 = arith.constant 0 : index
      %c0_27 = arith.constant 0 : index
      %22 = vector.load %arg3[%c0_25, %c0_26, %c0_27] : memref<1x1x16xf32, #tpu.memory_space<vmem>>, vector<1x1x16xf32>
      tpu.vector_store %arg3[%c0_25, %c0_26, %c0_27], %21 {strides = array<i32>} : memref<1x1x16xf32, #tpu.memory_space<vmem>>, vector<1x1x16xf32>,
      %cst_28 = arith.constant 0.000000e+00 : f32
      %23 = vector.broadcast %cst_28 : f32 to vector<1x1x15xf32>
      %c0_29 = arith.constant 0 : index
      %c0_30 = arith.constant 0 : index
      %c0_31 = arith.constant 0 : index
      %24 = vector.load %arg4[%c0_29, %c0_30, %c0_31] : memref<1x1x15xf32, #tpu.memory_space<vmem>>, vector<1x1x15xf32>
      tpu.vector_store %arg4[%c0_29, %c0_30, %c0_31], %23 {strides = array<i32>} : memref<1x1x15xf32, #tpu.memory_space<vmem>>, vector<1x1x15xf32>,
    } else {
    }
    %c0 = arith.constant 0 : index
    %c1 = arith.constant 1 : index
    %c0_1 = arith.constant 0 : index
    %3 = vector.load %arg2[%c0, %c1, %c0_1] : memref<4x16x16xf32, #tpu.memory_space<vmem>>, vector<4x15x16xf32>
    %c0_2 = arith.constant 0 : index
    %c0_3 = arith.constant 0 : index
    %c0_4 = arith.constant 0 : index
    %4 = vector.load %arg2[%c0_2, %c0_3, %c0_4] : memref<4x16x16xf32, #tpu.memory_space<vmem>>, vector<4x15x16xf32>
    %5 = arith.subf %3, %4 : vector<4x15x16xf32>
    %c0_5 = arith.constant 0 : index
    %c0_6 = arith.constant 0 : index
    %c1_7 = arith.constant 1 : index
    %6 = vector.load %arg2[%c0_5, %c0_6, %c1_7] : memref<4x16x16xf32, #tpu.memory_space<vmem>>, vector<4x16x15xf32>
    %c0_8 = arith.constant 0 : index
    %c0_9 = arith.constant 0 : index
    %c0_10 = arith.constant 0 : index
    %7 = vector.load %arg2[%c0_8, %c0_9, %c0_10] : memref<4x16x16xf32, #tpu.memory_space<vmem>>, vector<4x16x15xf32>
    %8 = arith.subf %6, %7 : vector<4x16x15xf32>
    %c0_11 = arith.constant 0 : index
    %c0_12 = arith.constant 0 : index
    %c0_13 = arith.constant 0 : index
    %9 = vector.load %arg3[%c0_11, %c0_12, %c0_13] : memref<1x1x16xf32, #tpu.memory_space<vmem>>, vector<1x1x16xf32>
    %10 = arith.mulf %5, %5 : vector<4x15x16xf32>
    %cst = arith.constant dense<0.000000e+00> : vector<16xf32>
    %11 = vector.multi_reduction <add>, %10, %cst [0, 1] : vector<4x15x16xf32> to vector<16xf32>
    %12 = vector.shape_cast %11 : vector<16xf32> to vector<1x1x16xf32>
    %13 = arith.addf %9, %12 : vector<1x1x16xf32>
    %c0_14 = arith.constant 0 : index
    %c0_15 = arith.constant 0 : index
    %c0_16 = arith.constant 0 : index
    %14 = vector.load %arg3[%c0_14, %c0_15, %c0_16] : memref<1x1x16xf32, #tpu.memory_space<vmem>>, vector<1x1x16xf32>
    tpu.vector_store %arg3[%c0_14, %c0_15, %c0_16], %13 {strides = array<i32>} : memref<1x1x16xf32, #tpu.memory_space<vmem>>, vector<1x1x16xf32>,
    %c0_17 = arith.constant 0 : index
    %c0_18 = arith.constant 0 : index
    %c0_19 = arith.constant 0 : index
    %15 = vector.load %arg4[%c0_17, %c0_18, %c0_19] : memref<1x1x15xf32, #tpu.memory_space<vmem>>, vector<1x1x15xf32>
    %16 = arith.mulf %8, %8 : vector<4x16x15xf32>
    %cst_20 = arith.constant dense<0.000000e+00> : vector<15xf32>
    %17 = vector.multi_reduction <add>, %16, %cst_20 [0, 1] : vector<4x16x15xf32> to vector<15xf32>
    %18 = vector.shape_cast %17 : vector<15xf32> to vector<1x1x15xf32>
    %19 = arith.addf %15, %18 : vector<1x1x15xf32>
    %c0_21 = arith.constant 0 : index
    %c0_22 = arith.constant 0 : index
    %c0_23 = arith.constant 0 : index
    %20 = vector.load %arg4[%c0_21, %c0_22, %c0_23] : memref<1x1x15xf32, #tpu.memory_space<vmem>>, vector<1x1x15xf32>
    tpu.vector_store %arg4[%c0_21, %c0_22, %c0_23], %19 {strides = array<i32>} : memref<1x1x15xf32, #tpu.memory_space<vmem>>, vector<1x1x15xf32>,
    return
  }
  func.func @transform_0(%arg0: i32, %arg1: i32) -> (i32, i32, i32) {
    %c1_i32 = arith.constant 1 : i32
    %0 = arith.muli %arg0, %c1_i32 : i32
    %1 = arith.addi %0, %arg1 : i32
    %c0_i32 = arith.constant 0 : i32
    %c0_i32_0 = arith.constant 0 : i32
    %c0_i32_1 = arith.constant 0 : i32
    return %1, %c0_i32, %c0_i32_0 : i32, i32, i32
  }
  func.func @transform_1(%arg0: i32, %arg1: i32) -> (i32, i32, i32) {
    %c0_i32 = arith.constant 0 : i32
    %c0_i32_0 = arith.constant 0 : i32
    %c0_i32_1 = arith.constant 0 : i32
    return %arg0, %c0_i32, %c0_i32_0 : i32, i32, i32
  }
  func.func @transform_2(%arg0: i32, %arg1: i32) -> (i32, i32, i32) {
    %c0_i32 = arith.constant 0 : i32
    %c0_i32_0 = arith.constant 0 : i32
    %c0_i32_1 = arith.constant 0 : i32
    return %arg0, %c0_i32, %c0_i32_0 : i32, i32, i32
  }
}

</mosaic_0001>

<bundles_post_ra>
// kernel: tvl2_loss.1
= control target key start
LH: loop header
LB: loop body
LE: loop exit
PB: predicated region body
PF: predicated region fallthrough
CT: control target
= control target key end

     0   :  { %8 = vsyncpa [#allocation3], 0  ;;  %s837_s0 = inlined_call_operand.hbm [shape: f32[8,16,16], index: 0, kind: input, shape index: {}]   ;;  %s838_s1 = inlined_call_operand.vmem [shape: f32[2,1,16], index: 1, kind: output, shape index: {0}]   ;;  %s839_s2 = inlined_call_operand.vmem [shape: f32[2,1,15], index: 2, kind: output, shape index: {1}]  }
   0x1   :  { %10 = vsyncpa [#allocation3 + $0x1], 0  ;;  %s622_s9 = smov 0   ;;  %s624_s10 = smov 0  }
   0x2   :  { %s626_s11 = smov 0   ;;  %s628_s12 = smov 0  }
   0x3   :  { %s630_s13 = smov 0   ;;  %s632_s14 = smov 0  }
   0x4 LB: > { %s443_s15 = sadd.s32 4294967295, %s598_s14   ;;  %s28_s16 = sadd.s32 1, %s594_s13  ;;  %s598_s14 = sphi %s632_s14, %s16_s14   ;;  %s594_s13 = sphi %s630_s13, %s847_s13   ;;  %s590_s12 = sphi %s628_s12, %s846_s12   ;;  %s586_s11 = sphi %s626_s11, %s845_s11   ;;  %s582_s10 = sphi %s624_s10, %s844_s10   ;;  %s578_s9 = sphi %s622_s9, %s843_s9  }
   0x5   : > { %p30_p0 = scmp.ge.s32.totalorder %s28_s16, 2  ;;  %s37_s17 = sadd.s32 1, %s586_s11 }
   0x6   : > { %p44_p1 = scmp.ne.s32.totalorder %s586_s11, %s582_s10  ;;  %p45_p2 = scmp.eq.s32.totalorder %s598_s14, 0 }
   0x7   : > { %s849_s16 = smov (%p30_p0, %s28_s16), 0  ;;  %p50_p4 = scmp.ne.s32.totalorder %s582_s10, %s578_s9 }
   0x8   : > { %p658_p3 = por %p45_p2, %p44_p1  ;;  %s34_s19 = ssub.s32 %s594_s13, %s849_s16 }
   0x9   : > { %p51_p5 = scmp.eq.s32.totalorder %s443_s15, 0  ;;  %p35_p6 = scmp.eq.s32.totalorder %s34_s19, 0 }
   0xa   : > { %p463_p8 = scmp.lt.s32.totalorder %s598_s14, 2  ;;  %s126_s22 = sand.u32 1, %s586_s11  }
   0xb   : > { %p665_p7 = por %p51_p5, %p50_p4  ;;  %s456_s23 = sshll.u32 %s594_s13, 10 }
   0xc   : > { %s671_s21 = scalar_select %p35_p6, %s586_s11, %s37_s17  }
   0xd   : > { %s447_s24 = sshll.u32 %s126_s22, 6  ;;  %s678_s27 = scalar_lea.hbm %s837_s0, %s456_s23 }
   0xe   : > { %s130_s28 = scalar_lea.vmem [#allocation2], %s447_s24  ;;  %p682_p9 = pnand %p463_p8, %p658_p3 }
   0xf   : > { %s139_s29 = sshll.u32 %s130_s28, 4  ;;  %s688_s3 = scalar_lea.sflag [#allocation3], %s126_s22  ;;  %s686_s29 = int_to_ptr.vmem [resolvable:$true] %s139_s29 }
  0x10   : > { %s518_s4 = scalar_lea.hbm %s678_s27, 1024  ;;  %p520_p11 = pneg %p682_p9 }
  0x11   : > { %p519_p10 = scmp.ne.s32.totalorder %s678_s27, %s518_s4  ;;  %s523_s7 = scalar_lea.hbm %s837_s0, 2048 }
  0x12   : > { %p524_p0 = scmp.lt.u32.totalorder %s678_s27, %s837_s0  ;;  %p525_p1 = scmp.lt.u32.totalorder %s523_s7, %s518_s4 }
  0x13   : > { %p521_p12 = pnand %p520_p11, %p519_p10  ;;  %p527_p3 = scmp.lt.u32.totalorder %s518_s4, %s678_s27 }
  0x14   : > { %p526_p2 = por %p525_p1, %p524_p0 }
  0x15   : > { %p522_p13 = pneg %p521_p12 }
  0x16   : > { %p528_p4 = por %p527_p3, %p526_p2 }
  0x18   : > { %p529_p5 = pnand %p528_p4, %p522_p13 }
  0x1a   : > { %532 = shalt.err (!%p529_p5)
}
  0x1b   : > { %s533_s15 = scalar_lea.vmem %s686_s29, 1024  ;;  %s600_s17 = smov [#allocation2]  }
  0x1c   : > { %p534_p6 = scmp.ne.s32.totalorder %s686_s29, %s533_s15  ;;  %s538_s18 = sshll.u32 %s600_s17, 4  ;;  %s539_s18 = int_to_ptr.vmem [resolvable:$false] %s538_s18 }
  0x1d   : > { %s540_s19 = scalar_lea.vmem %s539_s18, 2048  ;;  %p541_p12 = scmp.lt.s32.totalorder %s686_s29, %s539_s18 }
  0x1e   : > { %p536_p8 = pnand %p534_p6, %p520_p11  ;;  %p542_p0 = scmp.lt.s32.totalorder %s540_s19, %s533_s15 }
  0x20   : > { %p537_p10 = pneg %p536_p8  ;;  %p543_p1 = por %p542_p0, %p541_p12 }
  0x22   : > { %p544_p2 = pnand %p543_p1, %p537_p10 }
  0x24   : > { %547 = shalt.err (!%p544_p2)
}
  0x25   : > { %s601_s22 = smov 128   ;;  %s602_s23 = smov 8  }
  0x26   : > { %462 = dma.hbm_to_vmem [thread:$0]  (!%p682_p9), %s678_s27, 1024, %s686_s29, %s688_s3, %s601_s22, %s601_s22, %s602_s23  }
  0x27   : > { %p451_p11 = scmp.ge.s32.totalorder %s598_s14, 1  ;;  %p147_p13 = scmp.lt.s32.totalorder %s598_s14, 3 }
  0x29   : > { %p148_p3 = pnand %p451_p11, %p147_p13 }
  0x2a   : > { %s153_s24 = sand.u32 (!%p148_p3), 1, %s582_s10  }
  0x2b   : > { %151 = sbr.rel (%p148_p3) target bundleno = 324 (0x144), region = 24  ;;  %s452_s25 = sshll.u32 (!%p148_p3), %s153_s24, 6 }
  0x2c   : > { %s154_s26 = scalar_lea.sflag (!%p148_p3), [#allocation3], %s153_s24  ;;  %s719_s28 = scalar_lea.vmem (!%p148_p3), [#allocation2], %s452_s25 }
  0x32   : > { %573 = dma.done.wait (%p665_p7), %s154_s26, 1024  }
  0x33   : > { %575 = vsyncadd (%p665_p7), %s154_s26, 4294966272  ;;  %v726_v0 = vld [vmem:[%s719_s28] sm:$0xff]  ;;  %s603_s27 = smov 1   ;;  %v730_v1 = vld [vmem:[%s719_s28 + $0x10] sm:$0xff]  ;;  %p181_p7 = scmp.lt.s32.totalorder %s590_s12, 1  ;;  %vm191_vm0 = vcmask 122880  }
  0x34   : > { %231 = vrot.lane.b32.xlu0 %v726_v0, %s603_s27  ;;  %235 = vrot.lane.b32.xlu1 %v730_v1, %s603_s27  ;;  %v734_v2 = vld [vmem:[%s719_s28 + $0x8] sm:$0xff]  ;;  %v737_v3 = vld [vmem:[%s719_s28 + $0x18] sm:$0xff]  ;;  %vm193_vm1 = vcmask 114688   ;;  %v604_v8 = vmov 0.0   ;;  %vm272_vm2 = vcmask 130048   ;;  %vm274_vm3 = vcmask 129024  }
  0x35   : > { %v742_v4 = vld [vmem:[%s719_s28 + $0x20] sm:$0xff]  ;;  %v745_v5 = vld [vmem:[%s719_s28 + $0x28] sm:$0xff]  ;;  %v750_v6 = vld [vmem:[%s719_s28 + $0x30] sm:$0xff]  ;;  %s851_s12 = smov (!%p181_p7, %s590_s12), 1  ;;  %vm307_vm4 = vcmask 130056  }
  0x36   : > { %v753_v7 = vld [vmem:[%s719_s28 + $0x38] sm:$0xff]  ;;  %s762_s30 = scalar_lea.vmem %s838_s1, %s851_s12  ;;  %s767_s5 = scalar_lea.vmem %s839_s2, %s851_s12  ;;  %v204_v9 = vld [vmem:[%s719_s28 + $0x8] sm:$0x7f] }
  0x37   : > { %192 = vst.msk [vmem:[%s762_s30] sm:$0x1] %vm191_vm0, %v604_v8  ;;  %v195_v10 = vld [vmem:[%s719_s28 + $0x1] sm:$0xff]  ;;  %v196_v11 = vld [vmem:[%s719_s28 + $0x9] sm:$0x7f]  ;;  %v197_v14 = vld [vmem:[%s719_s28 + $0x11] sm:$0xff] }
  0x38   : > { %233 = vrot.lane.b32.xlu0 %v734_v2, %s603_s27  ;;  %237 = vrot.lane.b32.xlu1 %v737_v3, %s603_s27  ;;  %194 = vst.msk [vmem:[%s767_s5] sm:$0x1] %vm193_vm1, %v604_v8  ;;  %v211_v12 = vsub.f32 %v195_v10, %v726_v0  ;;  %v212_v13 = vsub.f32 %v196_v11, %v204_v9  ;;  %v206_v18 = vld [vmem:[%s719_s28 + $0x18] sm:$0x7f]  ;;  %s606_s12 = smov 127  }
  0x39   : > { %v213_v17 = vsub.f32 %v197_v14, %v730_v1  ;;  %v198_v19 = vld [vmem:[%s719_s28 + $0x19] sm:$0x7f]  ;;  %v199_v24 = vld [vmem:[%s719_s28 + $0x21] sm:$0xff]  ;;  %v200_v30 = vld [vmem:[%s719_s28 + $0x29] sm:$0x7f] }
  0x3a   : > { %v264_v15 = vmul.f32 %v211_v12, %v211_v12  ;;  %v265_v16 = vmul.f32 %v212_v13, %v212_v13  ;;  %v214_v23 = vsub.f32 %v198_v19, %v206_v18  ;;  %v215_v27 = vsub.f32 %v199_v24, %v742_v4  ;;  %v208_v29 = vld [vmem:[%s719_s28 + $0x28] sm:$0x7f]  ;;  %v201_v35 = vld [vmem:[%s719_s28 + $0x31] sm:$0xff]  ;;  %v202_v41 = vld [vmem:[%s719_s28 + $0x39] sm:$0x7f] }
  0x3b   : > { %v266_v22 = vmul.f32 %v213_v17, %v213_v17  ;;  %v216_v34 = vsub.f32 %v200_v30, %v208_v29  ;;  %v217_v38 = vsub.f32 %v201_v35, %v750_v6  ;;  %v210_v40 = vld [vmem:[%s719_s28 + $0x38] sm:$0x7f]  ;;  %v333_v35 = vlaneseq }
  0x3c   : > { %239 = vrot.lane.b32.xlu0 %v742_v4, %s603_s27  ;;  %241 = vrot.lane.b32.xlu1 %v745_v5, %s603_s27  ;;  %v273_v20 = vsel %vm272_vm2, %v264_v15, 0.0  ;;  %v275_v21 = vsel %vm274_vm3, %v265_v16, 0.0  ;;  %v267_v28 = vmul.f32 %v214_v23, %v214_v23  ;;  %v268_v32 = vmul.f32 %v215_v27, %v215_v27 }
  0x3d   : > { %v276_v25 = vadd.f32 %v275_v21, %v273_v20  ;;  %v277_v26 = vsel %vm272_vm2, %v266_v22, 0.0  ;;  %v269_v39 = vmul.f32 %v216_v34, %v216_v34  ;;  %v218_v43 = vsub.f32 %v202_v41, %v210_v40 }
  0x3e   : > { %v279_v33 = vsel %vm274_vm3, %v267_v28, 0.0  ;;  %v281_v37 = vsel %vm272_vm2, %v268_v32, 0.0  ;;  %v270_v44 = vmul.f32 %v217_v38, %v217_v38  ;;  %v605_v34 = vmov 1966171168   ;;  %v263_v38 = vld [vmem:[%s762_s30] sm:$0x1] }
  0x3f   : > { %v278_v31 = vadd.f32 %v277_v26, %v276_v25  ;;  %v283_v45 = vsel %vm274_vm3, %v269_v39, 0.0  ;;  %v271_v47 = vmul.f32 %v218_v43, %v218_v43 }
  0x40   : > { %243 = vrot.lane.b32.xlu0 %v750_v6, %s603_s27  ;;  %245 = vrot.lane.b32.xlu1 %v753_v7, %s603_s27  ;;  %v285_v48 = vsel %vm272_vm2, %v270_v44, 0.0 }
  0x41   : > { %v280_v36 = vadd.f32 %v279_v33, %v278_v31  ;;  %v287_v50 = vsel %vm274_vm3, %v271_v47, 0.0 }
  0x43   : > { %v282_v42 = vadd.f32 %v281_v37, %v280_v36 }
  0x45   : > { %v284_v46 = vadd.f32 %v283_v45, %v282_v42  ;;  %v334_v42 = vshrl.u32 %v333_v35, 7 }
  0x47   : > { %v286_v49 = vadd.f32 %v285_v48, %v284_v46 }
  0x49   : > { %v288_v54 = vadd.f32 %v287_v50, %v286_v49  ;;  %v298_v49 = vld [vmem:[%s767_s5] sm:$0x1] }
  0x4b   : > { %v289_v61 = vrot.slane %v288_v54, 4 }
  0xa6   : > { %v232_v51 = vpop.permute.xlu0 %231  ;;  %v236_v53 = vpop.permute.xlu1 %235 }
  0xa7   : > { %v255_v52 = vsub.f32 %v726_v0, %v232_v51  ;;  %v257_v55 = vsub.f32 %v730_v1, %v236_v53 }
  0xa9   : > { %v299_v57 = vmul.f32 %v255_v52, %v255_v52  ;;  %v301_v62 = vmul.f32 %v257_v55, %v257_v55 }
  0xaa   : > { %v234_v56 = vpop.permute.xlu0 %233  ;;  %v238_v59 = vpop.permute.xlu1 %237 }
  0xab   : > { %v256_v58 = vsub.f32 %v734_v2, %v234_v56  ;;  %v258_v60 = vsub.f32 %v737_v3, %v238_v59  ;;  %v308_v10 = vsel %vm307_vm4, %v299_v57, 0.0  ;;  %v290_v2 = vadd.f32 %v289_v61, %v288_v54 }
  0xac   : > { %v311_v14 = vsel %vm307_vm4, %v301_v62, 0.0 }
  0xad   : > { %v300_v63 = vmul.f32 %v256_v58, %v256_v58  ;;  %v302_v8 = vmul.f32 %v258_v60, %v258_v60  ;;  %v291_v23 = vrot.slane %v290_v2, 2 }
  0xae   : > { %v240_v9 = vpop.permute.xlu0 %239  ;;  %v242_v1 = vpop.permute.xlu1 %241 }
  0xaf   : > { %v309_v0 = vsel %vm307_vm4, %v300_v63, 0.0  ;;  %v259_v11 = vsub.f32 %v742_v4, %v240_v9  ;;  %v260_v13 = vsub.f32 %v745_v5, %v242_v1  ;;  %v313_v3 = vsel %vm307_vm4, %v302_v8, 0.0 }
  0xb0   : > { %v310_v12 = vadd.f32 %v309_v0, %v308_v10  ;;  %v292_v29 = vadd.f32 %v291_v23, %v290_v2 }
  0xb1   : > { %v303_v15 = vmul.f32 %v259_v11, %v259_v11  ;;  %v304_v17 = vmul.f32 %v260_v13, %v260_v13 }
  0xb2   : > { %v312_v16 = vadd.f32 %v311_v14, %v310_v12  ;;  %v244_v18 = vpop.permute.xlu0 %243  ;;  %v246_v21 = vpop.permute.xlu1 %245  ;;  %v293_v32 = vrot.slane %v292_v29, 1 }
  0xb3   : > { %v315_v19 = vsel %vm307_vm4, %v303_v15, 0.0  ;;  %v261_v20 = vsub.f32 %v750_v6, %v244_v18  ;;  %v262_v4 = vsub.f32 %v753_v7, %v246_v21  ;;  %v317_v5 = vsel %vm307_vm4, %v304_v17, 0.0 }
  0xb4   : > { %v314_v22 = vadd.f32 %v313_v3, %v312_v16  ;;  %v331_v7 = vunpack.c.l.s4 %v605_v34  ;;  %v294_v36 = vadd.f32 %v293_v32, %v292_v29 }
  0xb5   : > { %v305_v24 = vmul.f32 %v261_v20, %v261_v20  ;;  %v306_v26 = vmul.f32 %v262_v4, %v262_v4 }
  0xb6   : > { %v316_v25 = vadd.f32 %v315_v19, %v314_v22  ;;  %v295_v39 = vadd.f32 %v294_v36, %v263_v38  ;;  %v332_v41 = vunpack.c.0.s8 %v331_v7 }
  0xb7   : > { %v319_v27 = vsel %vm307_vm4, %v305_v24, 0.0  ;;  %v321_v30 = vsel %vm307_vm4, %v306_v26, 0.0 }
  0xb8   : > { %v318_v28 = vadd.f32 %v317_v5, %v316_v25  ;;  %297 = vst.msk [vmem:[%s762_s30] sm:$0x1] %vm191_vm0, %v295_v39  ;;  %v335_v45 = vsub.s32 %v332_v41, %v334_v42 }
  0xba   : > { %v320_v31 = vadd.f32 %v319_v27, %v318_v28 }
  0xbc   : > { %v322_v6 = vadd.f32 %v321_v30, %v320_v31 }
  0xbe   : > { %v323_v33 = vrot.slane %v322_v6, 4 }
  0xc0   : > { %v324_v37 = vadd.f32 %v323_v33, %v322_v6 }
  0xc2   : > { %v325_v40 = vrot.slane %v324_v37, 2 }
  0xc4   : > { %v326_v43 = vadd.f32 %v325_v40, %v324_v37 }
  0xc6   : > { %v327_v44 = vrot.slane %v326_v43, 1 }
  0xc8   : > { %v328_v46 = vadd.f32 %v327_v44, %v326_v43 }
  0xca   : > { %v336_v47 = vrot.slane %v328_v46, %v335_v45 }
  0xcc   : > { %v343_v48 = vrot.slane %v336_v47, %v335_v45 }
  0xce   : > { %344 = vrot.lane.b32.xlu0 %v343_v48, %s606_s12 }
 0x140   : > { %v345_v50 = vpop.permute.xlu0 %344 }
 0x141   : > { %v347_v51 = vadd.f32 %v345_v50, %v298_v49 }
 0x143   : > { %349 = vst.msk [vmem:[%s767_s5] sm:$0x1] %vm193_vm1, %v347_v51 }
 0x144 PF: > { %s16_s14 = sadd.s32 1, %s598_s14   ;;  %s843_s9 = smov %s582_s10 }
 0x145   : > { %p13_p9 = scmp.ge.s32.totalorder %s16_s14, 4   ;;  %s844_s10 = smov %s586_s11 }
 0x146   : > { %s845_s11 = smov %s671_s21  ;;  %s846_s12 = smov %s594_s13 }
 0x147   : > { %s847_s13 = smov %s849_s16  ;;  %15 = sbr.rel (!%p13_p9) target bundleno = 4 (0x4), region = 80 }
 0x14e   :  { %379 = vsyncpa [#allocation3], 1 }
 0x14f   :  { %381 = vsyncpa [#allocation3 + $0x1], 1 }

</bundles_post_ra>
